<compile_context>
chip_gen: v7x
topology: tpu7x:2x2x1
jax: 0.10.0
libtpu: 0.0.40
codegen_flags: <defaults>
</compile_context>

<pallas_src>
import jax
import jax.numpy as jnp
from jax.experimental import pallas as pl
from jax.experimental.pallas import tpu as pltpu


def _round_up(v, m=128):
    return ((v + m - 1) // m) * m


def _pad_to(a, shape):
    return jnp.pad(a, [(0, t - s) for s, t in zip(a.shape, shape)])


def _sage_fused_kernel(adj_ref, x_ref, ws0_ref, wn0_ref, b0_ref,
                       ws1_ref, wn1_ref, b1_ref, o_ref):
    """Fused 2-layer SAGE forward, everything resident in VMEM.

    adj_ref: [Np, Np]  bf16 dense adjacency (dst rows, src cols), zero-padded
    x_ref:   [Np, F0p] f32 node features, zero-padded
    ws*/wn*: [Fin_p, Fout_p] f32 transposed Linear weights, zero-padded
    b*:      [1, Fout_p] f32 bias, zero-padded
    o_ref:   [Np, Cp]  f32 output (padded; wrapper slices)
    """
    adj = adj_ref[...].astype(jnp.float32)      # 0/1 values: bf16 -> f32 is exact
    x = x_ref[...]

    # --- degree normalization: computed once, shared by both layers ---
    deg = jnp.sum(adj, axis=-1, keepdims=True)                       # [Np, 1]
    # max(deg, 1) keeps the reciprocal finite; zero-degree rows have an all-zero
    # adjacency row, so their aggregation is zero regardless of the scale used.
    inv_deg = pl.reciprocal(jnp.maximum(deg, 1.0), approx=True)      # EUP slot

    # --- layer 0: aggregate (narrow Fin) then project ---
    agg0 = jnp.dot(adj, x, preferred_element_type=jnp.float32) * inv_deg
    h = (jnp.dot(x, ws0_ref[...], preferred_element_type=jnp.float32)
         + jnp.dot(agg0, wn0_ref[...], preferred_element_type=jnp.float32)
         + b0_ref[...])
    h = jnp.maximum(h, 0.0)
    # TODO(synk): Dropout(0.5) in training mode (random mask + 2x scale) omitted;
    # eval-mode dropout is the identity, which is what is implemented here.

    # --- layer 1: project to narrow Fout first, then aggregate ---
    # ((adj @ h) * inv_deg) @ W == (adj @ (h @ W)) * inv_deg
    proj1 = jnp.dot(h, wn1_ref[...], preferred_element_type=jnp.float32)
    agg1 = jnp.dot(adj, proj1, preferred_element_type=jnp.float32) * inv_deg
    out = (jnp.dot(h, ws1_ref[...], preferred_element_type=jnp.float32)
           + agg1 + b1_ref[...])

    o_ref[...] = out.astype(o_ref.dtype)


@jax.jit
def sage_forward(params, adj, x):
    """SAGE.forward: conv0 -> ReLU -> Dropout(eval=identity) -> conv1, one kernel."""
    n, in_feats = x.shape
    n_hidden = params["w_self0"].shape[1]
    n_classes = params["w_self1"].shape[1]

    np_ = _round_up(n)
    f0p = _round_up(in_feats)
    hp = _round_up(n_hidden)
    cp = _round_up(n_classes)

    adj_p = _pad_to(adj, (np_, np_)).astype(jnp.bfloat16)   # 0/1 -> exact in bf16
    x_p = _pad_to(x, (np_, f0p))
    ws0 = _pad_to(params["w_self0"], (f0p, hp))
    wn0 = _pad_to(params["w_neigh0"], (f0p, hp))
    b0 = _pad_to(params["b0"].reshape(1, -1), (1, hp))
    ws1 = _pad_to(params["w_self1"], (hp, cp))
    wn1 = _pad_to(params["w_neigh1"], (hp, cp))
    b1 = _pad_to(params["b1"].reshape(1, -1), (1, cp))

    out_p = pl.pallas_call(
        _sage_fused_kernel,
        out_shape=jax.ShapeDtypeStruct((np_, cp), jnp.float32),
        in_specs=[pl.BlockSpec(memory_space=pltpu.MemorySpace.VMEM)] * 8,
        out_specs=pl.BlockSpec(memory_space=pltpu.MemorySpace.VMEM),
    )(adj_p, x_p, ws0, wn0, b0, ws1, wn1, b1)

    return out_p[:n, :n_classes]


def init_params(key, in_feats, n_hidden, n_classes):
    ks = jax.random.split(key, 4)
    scale0 = 1.0 / jnp.sqrt(in_feats)
    scale1 = 1.0 / jnp.sqrt(n_hidden)
    return {
        # stored already transposed: [F_in, F_out]
        "w_self0":  scale0 * jax.random.normal(ks[0], (in_feats, n_hidden), jnp.float32),
        "w_neigh0": scale0 * jax.random.normal(ks[1], (in_feats, n_hidden), jnp.float32),
        "b0":       jnp.zeros((n_hidden,), jnp.float32),
        "w_self1":  scale1 * jax.random.normal(ks[2], (n_hidden, n_classes), jnp.float32),
        "w_neigh1": scale1 * jax.random.normal(ks[3], (n_hidden, n_classes), jnp.float32),
        "b1":       jnp.zeros((n_classes,), jnp.float32),
    }


def _reference_forward(params, adj, x):
    """Pure-JAX reference for correctness checking."""
    def layer(a, h, ws, wn, b, relu):
        deg = jnp.sum(a, axis=-1, keepdims=True)
        inv = jnp.where(deg > 0.0, 1.0 / deg, 0.0)
        hn = (a @ h) * inv
        out = h @ ws + hn @ wn + b[None, :]
        return jnp.maximum(out, 0.0) if relu else out
    h = layer(adj, x, params["w_self0"], params["w_neigh0"], params["b0"], True)
    h = layer(adj, h, params["w_self1"], params["w_neigh1"], params["b1"], False)
    return h


if __name__ == "__main__":
    key = jax.random.PRNGKey(0)
    k_param, k_x, k_adj = jax.random.split(key, 3)

    # Small synthetic graph: 64 nodes, in_feats=16, n_hidden=32, n_classes=8.
    N, in_feats, n_hidden, n_classes = 64, 16, 32, 8

    params = init_params(k_param, in_feats, n_hidden, n_classes)
    x = jax.random.normal(k_x, (N, in_feats), jnp.float32)
    # Random directed graph as dense adjacency (dst rows, src cols), ~10% density.
    adj = (jax.random.uniform(k_adj, (N, N)) < 0.1).astype(jnp.float32)

    out = sage_forward(params, adj, x)
    out = jax.block_until_ready(out)

    ref = _reference_forward(params, adj, x)
    assert out.shape == (N, n_classes)
    # Tolerance covers the EUP approx-reciprocal (~1e-4 rel) and the layer-1
    # matmul reordering (summation-order differences).
    assert jnp.allclose(out, ref, atol=2e-3, rtol=2e-3), "mismatch vs reference"

    print("KERNEL_OK")
</pallas_src>

<mosaic_0001>
module attributes {stable_mosaic.version = 11 : i64} {
  func.func @_sage_fused_kernel(%arg0: memref<128x128xbf16, #tpu.memory_space<vmem>>, %arg1: memref<128x128xf32, #tpu.memory_space<vmem>>, %arg2: memref<128x128xf32, #tpu.memory_space<vmem>>, %arg3: memref<128x128xf32, #tpu.memory_space<vmem>>, %arg4: memref<1x128xf32, #tpu.memory_space<vmem>>, %arg5: memref<128x128xf32, #tpu.memory_space<vmem>>, %arg6: memref<128x128xf32, #tpu.memory_space<vmem>>, %arg7: memref<1x128xf32, #tpu.memory_space<vmem>>, %arg8: memref<128x128xf32, #tpu.memory_space<vmem>>) attributes {dimension_semantics = [], scalar_prefetch = 0 : i64, scratch_operands = 0 : i64, tpu.core_type = #tpu.core_type<tc>} {
    %c0 = arith.constant 0 : index
    %c0_0 = arith.constant 0 : index
    %0 = vector.load %arg0[%c0, %c0_0] : memref<128x128xbf16, #tpu.memory_space<vmem>>, vector<128x128xbf16>
    %1 = arith.extf %0 : vector<128x128xbf16> to vector<128x128xf32>
    %c0_1 = arith.constant 0 : index
    %c0_2 = arith.constant 0 : index
    %2 = vector.load %arg1[%c0_1, %c0_2] : memref<128x128xf32, #tpu.memory_space<vmem>>, vector<128x128xf32>
    %cst = arith.constant dense<0.000000e+00> : vector<128xf32>
    %3 = vector.multi_reduction <add>, %1, %cst [1] : vector<128x128xf32> to vector<128xf32>
    %4 = vector.shape_cast %3 : vector<128xf32> to vector<128x1xf32>
    %cst_3 = arith.constant 1.000000e+00 : f32
    %5 = vector.broadcast %cst_3 : f32 to vector<128x1xf32>
    %6 = arith.maximumf %4, %5 : vector<128x1xf32>
    %7 = tpu.reciprocal %6 {approx = true} : vector<128x1xf32> -> vector<128x1xf32>
    %cst_4 = arith.constant dense<0.000000e+00> : vector<128x128xf32>
    %8 = tpu.matmul %1, %2, %cst_4 {dimension_numbers = #tpu.dot_dimension_numbers<[1], [0], [0], [1], [0, 0, 1, 1], [], []>} : vector<128x128xf32>, vector<128x128xf32>, vector<128x128xf32> -> vector<128x128xf32>
    %9 = vector.broadcast %7 : vector<128x1xf32> to vector<128x128xf32>
    %10 = arith.mulf %8, %9 : vector<128x128xf32>
    %c0_5 = arith.constant 0 : index
    %c0_6 = arith.constant 0 : index
    %11 = vector.load %arg2[%c0_5, %c0_6] : memref<128x128xf32, #tpu.memory_space<vmem>>, vector<128x128xf32>
    %cst_7 = arith.constant dense<0.000000e+00> : vector<128x128xf32>
    %12 = tpu.matmul %2, %11, %cst_7 {dimension_numbers = #tpu.dot_dimension_numbers<[1], [0], [0], [1], [0, 0, 1, 1], [], []>} : vector<128x128xf32>, vector<128x128xf32>, vector<128x128xf32> -> vector<128x128xf32>
    %c0_8 = arith.constant 0 : index
    %c0_9 = arith.constant 0 : index
    %13 = vector.load %arg3[%c0_8, %c0_9] : memref<128x128xf32, #tpu.memory_space<vmem>>, vector<128x128xf32>
    %cst_10 = arith.constant dense<0.000000e+00> : vector<128x128xf32>
    %14 = tpu.matmul %10, %13, %cst_10 {dimension_numbers = #tpu.dot_dimension_numbers<[1], [0], [0], [1], [0, 0, 1, 1], [], []>} : vector<128x128xf32>, vector<128x128xf32>, vector<128x128xf32> -> vector<128x128xf32>
    %15 = arith.addf %12, %14 : vector<128x128xf32>
    %c0_11 = arith.constant 0 : index
    %c0_12 = arith.constant 0 : index
    %16 = vector.load %arg4[%c0_11, %c0_12] : memref<1x128xf32, #tpu.memory_space<vmem>>, vector<1x128xf32>
    %17 = vector.broadcast %16 : vector<1x128xf32> to vector<128x128xf32>
    %18 = arith.addf %15, %17 : vector<128x128xf32>
    %cst_13 = arith.constant 0.000000e+00 : f32
    %19 = vector.broadcast %cst_13 : f32 to vector<128x128xf32>
    %20 = arith.maximumf %18, %19 : vector<128x128xf32>
    %c0_14 = arith.constant 0 : index
    %c0_15 = arith.constant 0 : index
    %21 = vector.load %arg6[%c0_14, %c0_15] : memref<128x128xf32, #tpu.memory_space<vmem>>, vector<128x128xf32>
    %cst_16 = arith.constant dense<0.000000e+00> : vector<128x128xf32>
    %22 = tpu.matmul %20, %21, %cst_16 {dimension_numbers = #tpu.dot_dimension_numbers<[1], [0], [0], [1], [0, 0, 1, 1], [], []>} : vector<128x128xf32>, vector<128x128xf32>, vector<128x128xf32> -> vector<128x128xf32>
    %cst_17 = arith.constant dense<0.000000e+00> : vector<128x128xf32>
    %23 = tpu.matmul %1, %22, %cst_17 {dimension_numbers = #tpu.dot_dimension_numbers<[1], [0], [0], [1], [0, 0, 1, 1], [], []>} : vector<128x128xf32>, vector<128x128xf32>, vector<128x128xf32> -> vector<128x128xf32>
    %24 = vector.broadcast %7 : vector<128x1xf32> to vector<128x128xf32>
    %25 = arith.mulf %23, %24 : vector<128x128xf32>
    %c0_18 = arith.constant 0 : index
    %c0_19 = arith.constant 0 : index
    %26 = vector.load %arg5[%c0_18, %c0_19] : memref<128x128xf32, #tpu.memory_space<vmem>>, vector<128x128xf32>
    %cst_20 = arith.constant dense<0.000000e+00> : vector<128x128xf32>
    %27 = tpu.matmul %20, %26, %cst_20 {dimension_numbers = #tpu.dot_dimension_numbers<[1], [0], [0], [1], [0, 0, 1, 1], [], []>} : vector<128x128xf32>, vector<128x128xf32>, vector<128x128xf32> -> vector<128x128xf32>
    %28 = arith.addf %27, %25 : vector<128x128xf32>
    %c0_21 = arith.constant 0 : index
    %c0_22 = arith.constant 0 : index
    %29 = vector.load %arg7[%c0_21, %c0_22] : memref<1x128xf32, #tpu.memory_space<vmem>>, vector<1x128xf32>
    %30 = vector.broadcast %29 : vector<1x128xf32> to vector<128x128xf32>
    %31 = arith.addf %28, %30 : vector<128x128xf32>
    %c0_23 = arith.constant 0 : index
    %c0_24 = arith.constant 0 : index
    %32 = vector.load %arg8[%c0_23, %c0_24] : memref<128x128xf32, #tpu.memory_space<vmem>>, vector<128x128xf32>
    tpu.vector_store %arg8[%c0_23, %c0_24], %31 {strides = array<i32>} : memref<128x128xf32, #tpu.memory_space<vmem>>, vector<128x128xf32>,
    return
  }
}

</mosaic_0001>

<bundles_post_ra>
// kernel: sage_forward.1
= control target key start
LH: loop header
LB: loop body
LE: loop exit
PB: predicated region body
PF: predicated region fallthrough
CT: control target
= control target key end

     0   :  { %s2657_s1 = inlined_call_operand.vmem [shape: f32[128,128], index: 1, kind: input, shape index: {}]   ;;  %s2658_s0 = inlined_call_operand.vmem [shape: bf16[128,128], index: 0, kind: input, shape index: {}]   ;;  %s2659_s3 = inlined_call_operand.vmem [shape: f32[128,128], index: 3, kind: input, shape index: {}]   ;;  %s2660_s2 = inlined_call_operand.vmem [shape: f32[128,128], index: 2, kind: input, shape index: {}]   ;;  %s2661_s6 = inlined_call_operand.vmem [shape: f32[128,128], index: 6, kind: input, shape index: {}]   ;;  %s2662_s5 = inlined_call_operand.vmem [shape: f32[128,128], index: 5, kind: input, shape index: {}]   ;;  %s2663_s4 = inlined_call_operand.vmem [shape: f32[1,128], index: 4, kind: input, shape index: {}]   ;;  %s2664_s7 = inlined_call_operand.vmem [shape: f32[1,128], index: 7, kind: input, shape index: {}]   ;;  %s2665_s8 = inlined_call_operand.vmem [shape: f32[128,128], index: 8, kind: output, shape index: {}]  }
   0x1   :  { %v2046_v0 = vld [vmem:[%s2657_s1] sm:$0xff]  ;;  %v2051_v1 = vld [vmem:[%s2657_s1 + $0x8] sm:$0xff]  ;;  %v2056_v2 = vld [vmem:[%s2657_s1 + $0x10] sm:$0xff] }
   0x2   :  { %v1758_v3 = vpack.c.bf16 %v2051_v1, %v2046_v0  ;;  %v2063_v4 = vld [vmem:[%s2657_s1 + $0x18] sm:$0xff]  ;;  %v2070_v6 = vld [vmem:[%s2657_s1 + $0x20] sm:$0xff]  ;;  %v2075_v7 = vld [vmem:[%s2657_s1 + $0x28] sm:$0xff] }
   0x3   :  { %v1762_v5 = vpack.c.bf16 %v2063_v4, %v2056_v2  ;;  %v1766_v8 = vpack.c.bf16 %v2075_v7, %v2070_v6  ;;  %v1192_v9 = vld [vmem:[%s2658_s0] sm:$0xff]   ;;  %v1223_v10 = vld [vmem:[%s2658_s0 + $0x8] sm:$0xff]   ;;  %v2088_v11 = vld [vmem:[%s2657_s1 + $0x30] sm:$0xff] }
   0x4   :  { %1759 = vmatprep.subr.bf16.mxu0 %v1758_v3  ;;  %v2093_v12 = vld [vmem:[%s2657_s1 + $0x38] sm:$0xff]  ;;  %v2095_v13 = vunpack.c.l.bf16 %v1192_v9  ;;  %v2098_v14 = vunpack.c.l.bf16 %v1223_v10  ;;  %v318_v15 = vld [vmem:[%s2659_s3] sm:$0xff]  ;;  %v319_v16 = vld [vmem:[%s2659_s3 + $0x8] sm:$0xff]  ;;  %v2126_v23 = vunpack.c.h.bf16 %v1192_v9  ;;  %v2128_v25 = vunpack.c.h.bf16 %v1223_v10 }
   0x5   :  { %1761 = vmatpush3.bf16.msra.mxu0 %v1758_v3  ;;  %v320_v17 = vld [vmem:[%s2659_s3 + $0x10] sm:$0xff]  ;;  %v1770_v18 = vpack.c.bf16 %v2093_v12, %v2088_v11  ;;  %v321_v19 = vld [vmem:[%s2659_s3 + $0x18] sm:$0xff]  ;;  %v2118_v20 = vld [vmem:[%s2657_s1 + $0x40] sm:$0xff]  ;;  %v1790_v22 = vpack.c.bf16 %v319_v16, %v318_v15 }
   0x6   :  { %1763 = vmatprep.subr.bf16.mxu0 %v1762_v5  ;;  %1454 = vmatprep.mubr.f32.mxu0 %v2095_v13  ;;  %v2123_v21 = vld [vmem:[%s2657_s1 + $0x48] sm:$0xff]  ;;  %v1794_v24 = vpack.c.bf16 %v321_v19, %v320_v17  ;;  %v1224_v26 = vld [vmem:[%s2658_s0 + $0x10] sm:$0xff]   ;;  %v322_v27 = vld [vmem:[%s2659_s3 + $0x20] sm:$0xff] }
   0x7   :  { %77 = vadd.xlane.f32.xlu0 %v2095_v13  ;;  %81 = vadd.xlane.f32.xlu1 %v2098_v14  ;;  %v323_v28 = vld [vmem:[%s2659_s3 + $0x28] sm:$0xff]  ;;  %v1774_v29 = vpack.c.bf16 %v2123_v21, %v2118_v20  ;;  %v2145_v30 = vld [vmem:[%s2657_s1 + $0x50] sm:$0xff]  ;;  %v2150_v31 = vld [vmem:[%s2657_s1 + $0x58] sm:$0xff]  ;;  %v2153_v32 = vunpack.c.l.bf16 %v1224_v26  ;;  %v2155_v34 = vunpack.c.h.bf16 %v1224_v26 }
   0x8   :  { %1791 = vmatprep.subr.bf16.mxu1 %v1790_v22  ;;  %v1798_v33 = vpack.c.bf16 %v323_v28, %v322_v27  ;;  %v1225_v35 = vld [vmem:[%s2658_s0 + $0x18] sm:$0xff]   ;;  %v1778_v36 = vpack.c.bf16 %v2150_v31, %v2145_v30  ;;  %v2166_v37 = vld [vmem:[%s2657_s1 + $0x60] sm:$0xff]  ;;  %v2171_v38 = vld [vmem:[%s2657_s1 + $0x68] sm:$0xff] }
   0x9   :  { %1765 = vmatpush3.bf16.msra.mxu0 %v1762_v5  ;;  %1793 = vmatpush3.bf16.msra.mxu1 %v1790_v22  ;;  %v2174_v39 = vunpack.c.l.bf16 %v1225_v35  ;;  %v2176_v40 = vunpack.c.h.bf16 %v1225_v35  ;;  %v1226_v41 = vld [vmem:[%s2658_s0 + $0x20] sm:$0xff]   ;;  %v1782_v42 = vpack.c.bf16 %v2171_v38, %v2166_v37  ;;  %v2187_v43 = vld [vmem:[%s2657_s1 + $0x70] sm:$0xff]  ;;  %v2192_v44 = vld [vmem:[%s2657_s1 + $0x78] sm:$0xff] }
   0xa   :  { %1767 = vmatprep.subr.bf16.mxu0 %v1766_v8  ;;  %1795 = vmatprep.subr.bf16.mxu1 %v1794_v24  ;;  %v2195_v45 = vunpack.c.l.bf16 %v1226_v41  ;;  %v2197_v46 = vunpack.c.h.bf16 %v1226_v41  ;;  %v1227_v47 = vld [vmem:[%s2658_s0 + $0x28] sm:$0xff]   ;;  %v1786_v48 = vpack.c.bf16 %v2192_v44, %v2187_v43  ;;  %v324_v49 = vld [vmem:[%s2659_s3 + $0x30] sm:$0xff]  ;;  %v325_v50 = vld [vmem:[%s2659_s3 + $0x38] sm:$0xff] }
   0xb   :  { %79 = vadd.xlane.f32.xlu0 %v2126_v23  ;;  %83 = vadd.xlane.f32.xlu1 %v2128_v25  ;;  %v1802_v51 = vpack.c.bf16 %v325_v50, %v324_v49  ;;  %v2212_v52 = vunpack.c.l.bf16 %v1227_v47  ;;  %v2214_v53 = vunpack.c.h.bf16 %v1227_v47  ;;  %v1228_v54 = vld [vmem:[%s2658_s0 + $0x30] sm:$0xff]   ;;  %v326_v55 = vld [vmem:[%s2659_s3 + $0x40] sm:$0xff]  ;;  %v327_v56 = vld [vmem:[%s2659_s3 + $0x48] sm:$0xff] }
   0xc   :  { %v1806_v57 = vpack.c.bf16 %v327_v56, %v326_v55  ;;  %v328_v58 = vld [vmem:[%s2659_s3 + $0x50] sm:$0xff]  ;;  %v329_v59 = vld [vmem:[%s2659_s3 + $0x58] sm:$0xff]  ;;  %v2233_v60 = vunpack.c.l.bf16 %v1228_v54  ;;  %v2235_v62 = vunpack.c.h.bf16 %v1228_v54  ;;  %v330_v3 = vld [vmem:[%s2659_s3 + $0x60] sm:$0xff] }
   0xd   :  { %1769 = vmatpush3.bf16.msra.mxu0 %v1766_v8  ;;  %1797 = vmatpush3.bf16.msra.mxu1 %v1794_v24  ;;  %v1810_v61 = vpack.c.bf16 %v329_v59, %v328_v58  ;;  %v1229_v63 = vld [vmem:[%s2658_s0 + $0x38] sm:$0xff]   ;;  %v331_v5 = vld [vmem:[%s2659_s3 + $0x68] sm:$0xff]  ;;  %v332_v15 = vld [vmem:[%s2659_s3 + $0x70] sm:$0xff] }
   0xe   :  { %1771 = vmatprep.subr.bf16.mxu0 %v1770_v18  ;;  %1799 = vmatprep.subr.bf16.mxu1 %v1798_v33  ;;  %v2249_v8 = vunpack.c.l.bf16 %v1229_v63  ;;  %v1814_v9 = vpack.c.bf16 %v331_v5, %v330_v3  ;;  %v2252_v10 = vunpack.c.h.bf16 %v1229_v63  ;;  %v333_v16 = vld [vmem:[%s2659_s3 + $0x78] sm:$0xff]  ;;  %v303_v19 = vld [vmem:[%s2660_s2 + $0x8] sm:$0xff]  ;;  %v663_v24 = vld [vmem:[%s2661_s6] sm:$0xff] }
   0xf   :  { %85 = vadd.xlane.f32.xlu0 %v2153_v32  ;;  %87 = vadd.xlane.f32.xlu1 %v2155_v34  ;;  %v1818_v17 = vpack.c.bf16 %v333_v16, %v332_v15  ;;  %v664_v26 = vld [vmem:[%s2661_s6 + $0x8] sm:$0xff]  ;;  %v665_v28 = vld [vmem:[%s2661_s6 + $0x10] sm:$0xff]  ;;  %v667_v35 = vld [vmem:[%s2661_s6 + $0x20] sm:$0xff] }
  0x10   :  { %v1854_v27 = vpack.c.bf16 %v664_v26, %v663_v24  ;;  %v670_v47 = vld [vmem:[%s2661_s6 + $0x38] sm:$0xff]  ;;  %v671_v49 = vld [vmem:[%s2661_s6 + $0x40] sm:$0xff]  ;;  %v672_v50 = vld [vmem:[%s2661_s6 + $0x48] sm:$0xff] }
  0x11   :  { %1773 = vmatpush3.bf16.msra.mxu0 %v1770_v18  ;;  %1801 = vmatpush3.bf16.msra.mxu1 %v1798_v33  ;;  %v302_v18 = vld [vmem:[%s2660_s2] sm:$0xff]  ;;  %v673_v54 = vld [vmem:[%s2661_s6 + $0x50] sm:$0xff]  ;;  %v674_v55 = vld [vmem:[%s2661_s6 + $0x58] sm:$0xff] }
  0x12   :  { %1775 = vmatprep.subr.bf16.mxu0 %v1774_v29  ;;  %1803 = vmatprep.subr.bf16.mxu1 %v1802_v51  ;;  %v2281_v22 = vpack.c.bf16 %v303_v19, %v302_v18  ;;  %v1874_v56 = vpack.c.bf16 %v674_v55, %v673_v54  ;;  %v676_v58 = vld [vmem:[%s2661_s6 + $0x68] sm:$0xff] }
  0x13   :  { %89 = vadd.xlane.f32.xlu0 %v2174_v39  ;;  %91 = vadd.xlane.f32.xlu1 %v2176_v40 }
  0x15   :  { %1777 = vmatpush3.bf16.msra.mxu0 %v1774_v29  ;;  %1805 = vmatpush3.bf16.msra.mxu1 %v1802_v51  ;;  %v666_v29 = vld [vmem:[%s2661_s6 + $0x18] sm:$0xff]  ;;  %v1870_v51 = vpack.c.bf16 %v672_v50, %v671_v49  ;;  %v304_v49 = vld [vmem:[%s2660_s2 + $0x10] sm:$0xff] }
  0x16   :  { %1779 = vmatprep.subr.bf16.mxu0 %v1778_v36  ;;  %1807 = vmatprep.subr.bf16.mxu1 %v1806_v57  ;;  %v1858_v33 = vpack.c.bf16 %v666_v29, %v665_v28  ;;  %v305_v50 = vld [vmem:[%s2660_s2 + $0x18] sm:$0xff] }
  0x17   :  { %93 = vadd.xlane.f32.xlu0 %v2195_v45  ;;  %95 = vadd.xlane.f32.xlu1 %v2197_v46 }
  0x19   :  { %1781 = vmatpush3.bf16.msra.mxu0 %v1778_v36  ;;  %1809 = vmatpush3.bf16.msra.mxu1 %v1806_v57  ;;  %v668_v36 = vld [vmem:[%s2661_s6 + $0x28] sm:$0xff]  ;;  %v675_v57 = vld [vmem:[%s2661_s6 + $0x60] sm:$0xff] }
  0x1a   :  { %1783 = vmatprep.subr.bf16.mxu0 %v1782_v42  ;;  %1811 = vmatprep.subr.bf16.mxu1 %v1810_v61  ;;  %v1862_v41 = vpack.c.bf16 %v668_v36, %v667_v35  ;;  %v1878_v59 = vpack.c.bf16 %v676_v58, %v675_v57 }
  0x1b   :  { %97 = vadd.xlane.f32.xlu0 %v2212_v52  ;;  %99 = vadd.xlane.f32.xlu1 %v2214_v53 }
  0x1d   :  { %1785 = vmatpush3.bf16.msra.mxu0 %v1782_v42  ;;  %1813 = vmatpush3.bf16.msra.mxu1 %v1810_v61  ;;  %v669_v42 = vld [vmem:[%s2661_s6 + $0x30] sm:$0xff] }
  0x1e   :  { %1787 = vmatprep.subr.bf16.mxu0 %v1786_v48  ;;  %1815 = vmatprep.subr.bf16.mxu1 %v1814_v9 }
  0x1f   :  { %101 = vadd.xlane.f32.xlu0 %v2233_v60  ;;  %103 = vadd.xlane.f32.xlu1 %v2235_v62 }
  0x21   :  { %1789 = vmatpush3.bf16.msra.mxu0 %v1786_v48  ;;  %1817 = vmatpush3.bf16.msra.mxu1 %v1814_v9  ;;  %v1866_v48 = vpack.c.bf16 %v670_v47, %v669_v42 }
  0x22   :  { %1819 = vmatprep.subr.bf16.mxu1 %v1818_v17  ;;  %1855 = vmatprep.subr.bf16.mxu0 %v1854_v27 }
  0x23   :  { %105 = vadd.xlane.f32.xlu0 %v2249_v8  ;;  %107 = vadd.xlane.f32.xlu1 %v2252_v10 }
  0x24   :  { %1455 = vmatmul.mubr.f32.vlgmr.msra.gmra.mrb[0].mxu0 %v2126_v23 }
  0x25   :  { %1457 = vmatprep.mubr.f32.mxu0 %v2098_v14  ;;  %1821 = vmatpush3.bf16.msra.mxu1 %v1818_v17 }
  0x26   :  { %1823 = vmatprep.subr.bf16.mxu1 %v2281_v22  ;;  %1857 = vmatpush3.bf16.msra.mxu0 %v1854_v27 }
  0x27   :  { %1859 = vmatprep.subr.bf16.mxu0 %v1858_v33 }
  0x28   :  { %1458 = vmatmul.mubr.f32.gmra.mrb[2].mxu0 %v2128_v25 }
  0x29   :  { %1460 = vmatprep.mubr.f32.mxu0 %v2153_v32 }
  0x2a   :  { %1861 = vmatpush3.bf16.msra.mxu0 %v1858_v33 }
  0x2b   :  { %1863 = vmatprep.subr.bf16.mxu0 %v1862_v41 }
  0x2c   :  { %1461 = vmatmul.mubr.f32.gmra.mrb[4].mxu0 %v2155_v34 }
  0x2d   :  { %1463 = vmatprep.mubr.f32.mxu0 %v2174_v39 }
  0x2e   :  { %1865 = vmatpush3.bf16.msra.mxu0 %v1862_v41 }
  0x2f   :  { %1867 = vmatprep.subr.bf16.mxu0 %v1866_v48 }
  0x30   :  { %1464 = vmatmul.mubr.f32.gmra.mrb[6].mxu0 %v2176_v40 }
  0x31   :  { %1466 = vmatprep.mubr.f32.mxu0 %v2195_v45 }
  0x32   :  { %1869 = vmatpush3.bf16.msra.mxu0 %v1866_v48 }
  0x33   :  { %1871 = vmatprep.subr.bf16.mxu0 %v1870_v51 }
  0x34   :  { %1467 = vmatmul.mubr.f32.gmra.mrb[8].mxu0 %v2197_v46 }
  0x35   :  { %1469 = vmatprep.mubr.f32.mxu0 %v2212_v52 }
  0x36   :  { %1873 = vmatpush3.bf16.msra.mxu0 %v1870_v51 }
  0x37   :  { %1875 = vmatprep.subr.bf16.mxu0 %v1874_v56 }
  0x38   :  { %1470 = vmatmul.mubr.f32.gmra.mrb[10].mxu0 %v2214_v53 }
  0x39   :  { %1472 = vmatprep.mubr.f32.mxu0 %v2233_v60 }
  0x3a   :  { %1877 = vmatpush3.bf16.msra.mxu0 %v1874_v56 }
  0x3b   :  { %1879 = vmatprep.subr.bf16.mxu0 %v1878_v59 }
  0x3c   :  { %1473 = vmatmul.mubr.f32.gmra.mrb[12].mxu0 %v2235_v62 }
  0x3d   :  { %1475 = vmatprep.mubr.f32.mxu0 %v2249_v8 }
  0x3e   :  { %1881 = vmatpush3.bf16.msra.mxu0 %v1878_v59  ;;  %v1826_v59 = vpack.c.bf16 %v305_v50, %v304_v49 }
  0x40   :  { %1476 = vmatmul.mubr.f32.gmra.mrb[14].mxu0 %v2252_v10 }
  0x94   :  { %v82_v61 = vpop.xlane.xlu1 %81  ;;  %v78_v63 = vpop.xlane.xlu0 %77 }
  0x95   :  { %v109_v18 = vmax.f32 %v78_v63, 1.0  ;;  %v111_v26 = vmax.f32 %v82_v61, 1.0 }
  0x98   :  { %v84_v3 = vpop.xlane.xlu1 %83  ;;  %v80_v5 = vpop.xlane.xlu0 %79 }
  0x99   :  { %v110_v16 = vmax.f32 %v80_v5, 1.0  ;;  %v112_v24 = vmax.f32 %v84_v3, 1.0  ;;  %v306_v5 = vld [vmem:[%s2660_s2 + $0x20] sm:$0xff] }
  0x9b   :  { %1966 = vrcp.f32 %v110_v16 }
  0x9c   :  { %v86_v9 = vpop.xlane.xlu0 %85  ;;  %v88_v15 = vpop.xlane.xlu1 %87  ;;  %1968 = vrcp.f32 %v109_v18 }
  0x9d   :  { %v113_v28 = vmax.f32 %v86_v9, 1.0  ;;  %1970 = vrcp.f32 %v112_v24  ;;  %v114_v33 = vmax.f32 %v88_v15, 1.0  ;;  %v307_v9 = vld [vmem:[%s2660_s2 + $0x28] sm:$0xff] }
  0x9e   :  { %1972 = vrcp.f32 %v111_v26 }
  0x9f   :  { %1974 = vrcp.f32 %v113_v28  ;;  %v1830_v28 = vpack.c.bf16 %v307_v9, %v306_v5 }
  0xa0   :  { %v90_v17 = vpop.xlane.xlu0 %89  ;;  %v92_v19 = vpop.xlane.xlu1 %91  ;;  %1976 = vrcp.f32 %v114_v33 }
  0xa1   :  { %v115_v35 = vmax.f32 %v90_v17, 1.0  ;;  %v116_v36 = vmax.f32 %v92_v19, 1.0 }
  0xa3   :  { %1978 = vrcp.f32 %v115_v35  ;;  %v308_v35 = vld [vmem:[%s2660_s2 + $0x30] sm:$0xff] }
  0xa4   :  { %v94_v27 = vpop.xlane.xlu0 %93  ;;  %v96_v29 = vpop.xlane.xlu1 %95  ;;  %1980 = vrcp.f32 %v116_v36  ;;  %v309_v36 = vld [vmem:[%s2660_s2 + $0x38] sm:$0xff] }
  0xa5   :  { %v2326_v47 = vpop.eup %1966  ;;  %v117_v55 = vmax.f32 %v94_v27, 1.0  ;;  %v118_v56 = vmax.f32 %v96_v29, 1.0 }
  0xa6   :  { %v2334_v51 = vpop.eup %1968 }
  0xa7   :  { %v2338_v61 = vpop.eup %1970  ;;  %1982 = vrcp.f32 %v117_v55 }
  0xa8   :  { %v98_v41 = vpop.xlane.xlu0 %97  ;;  %v100_v42 = vpop.xlane.xlu1 %99  ;;  %1984 = vrcp.f32 %v118_v56  ;;  %v1834_v56 = vpack.c.bf16 %v309_v36, %v308_v35  ;;  %v313_v35 = vld [vmem:[%s2660_s2 + $0x58] sm:$0xff] }
  0xa9   :  { %v2346_v15 = vpop.eup %1972  ;;  %v119_v17 = vmax.f32 %v98_v41, 1.0  ;;  %v120_v24 = vmax.f32 %v100_v42, 1.0 }
  0xaa   :  { %v2350_v26 = vpop.eup %1974 }
  0xab   :  { %v2353_v29 = vpop.eup %1976  ;;  %1986 = vrcp.f32 %v119_v17 }
  0xac   :  { %v102_v3 = vpop.xlane.xlu0 %101  ;;  %v104_v18 = vpop.xlane.xlu1 %103  ;;  %1988 = vrcp.f32 %v120_v24 }
  0xad   :  { %v121_v41 = vmax.f32 %v102_v3, 1.0  ;;  %v2362_v50 = vpop.eup %1978 }
  0xaf   :  { %1990 = vrcp.f32 %v121_v41 }
  0xb0   :  { %v106_v49 = vpop.xlane.xlu0 %105  ;;  %v108_v55 = vpop.xlane.xlu1 %107 }
  0xb1   :  { %v123_v5 = vmax.f32 %v106_v49, 1.0 }
  0xf7   :  { %v1456_v48 = vpop.f32.mrb[0].mxu0 }
  0xf8   :  { %v207_v54 = vpop.f32.mrb[1].mxu0  ;;  %v287_v58 = vmul.f32 %v2326_v47, %v1456_v48  ;;  %v122_v48 = vmax.f32 %v104_v18, 1.0 }
  0xf9   :  { %v286_v57 = vmul.f32 %v2334_v51, %v207_v54 }
  0xfa   :  { %1992 = vrcp.f32 %v122_v48 }
  0xfb   :  { %v1459_v63 = vpop.f32.mrb[2].mxu0  ;;  %1510 = vmatprep.mubr.f32.mxu1 %v286_v57  ;;  %v2365_v57 = vpop.eup %1980  ;;  %1994 = vrcp.f32 %v123_v5 }
  0xfc   :  { %v217_v16 = vpop.f32.mrb[3].mxu0  ;;  %1511 = vmatmul.mubr.f32.vlgmr.msra.gmra.mrb[0].mxu1 %v287_v58  ;;  %v289_v27 = vmul.f32 %v2338_v61, %v1459_v63  ;;  %v310_v63 = vld [vmem:[%s2660_s2 + $0x40] sm:$0xff]  ;;  %v2374_v17 = vpop.eup %1982 }
  0xfd   :  { %v288_v19 = vmul.f32 %v2346_v15, %v217_v16  ;;  %1825 = vmatpush3.bf16.msra.mxu1 %v2281_v22  ;;  %v124_v16 = vmax.f32 %v108_v55, 1.0  ;;  %v2377_v24 = vpop.eup %1984  ;;  %v315_v55 = vld [vmem:[%s2660_s2 + $0x68] sm:$0xff] }
  0xfe   :  { %1827 = vmatprep.subr.bf16.mxu1 %v1826_v59 }
  0xff   :  { %v1462_v33 = vpop.f32.mrb[4].mxu0  ;;  %1513 = vmatprep.mubr.f32.mxu1 %v288_v19  ;;  %1996 = vrcp.f32 %v124_v16  ;;  %v316_v16 = vld [vmem:[%s2660_s2 + $0x70] sm:$0xff] }
 0x100   :  { %v227_v22 = vpop.f32.mrb[5].mxu0  ;;  %1514 = vmatmul.mubr.f32.gmra.mrb[2].mxu1 %v289_v27  ;;  %v291_v54 = vmul.f32 %v2353_v29, %v1462_v33  ;;  %v312_v33 = vld [vmem:[%s2660_s2 + $0x50] sm:$0xff] }
 0x101   :  { %v290_v42 = vmul.f32 %v2350_v26, %v227_v22  ;;  %1829 = vmatpush3.bf16.msra.mxu1 %v1826_v59  ;;  %v311_v59 = vld [vmem:[%s2660_s2 + $0x48] sm:$0xff]  ;;  %v2386_v22 = vpop.eup %1986 }
 0x102   :  { %1831 = vmatprep.subr.bf16.mxu1 %v1830_v28  ;;  %v1838_v19 = vpack.c.bf16 %v311_v59, %v310_v63  ;;  %v2389_v48 = vpop.eup %1988 }
 0x103   :  { %v1465_v58 = vpop.f32.mrb[6].mxu0  ;;  %1516 = vmatprep.mubr.f32.mxu1 %v290_v42  ;;  %v1842_v42 = vpack.c.bf16 %v313_v35, %v312_v33  ;;  %v2398_v63 = vpop.eup %1990 }
 0x104   :  { %v237_v3 = vpop.f32.mrb[7].mxu0  ;;  %1517 = vmatmul.mubr.f32.gmra.mrb[4].mxu1 %v291_v54  ;;  %v293_v18 = vmul.f32 %v2365_v57, %v1465_v58  ;;  %v314_v54 = vld [vmem:[%s2660_s2 + $0x60] sm:$0xff]  ;;  %v2401_v5 = vpop.eup %1992 }
 0x105   :  { %v292_v9 = vmul.f32 %v2362_v50, %v237_v3  ;;  %1833 = vmatpush3.bf16.msra.mxu1 %v1830_v28  ;;  %v1846_v3 = vpack.c.bf16 %v315_v55, %v314_v54  ;;  %v2410_v33 = vpop.eup %1994  ;;  %v986_v54 = vld [vmem:[%s2662_s5 + $0x8] sm:$0xff] }
 0x106   :  { %1835 = vmatprep.subr.bf16.mxu1 %v1834_v56 }
 0x107   :  { %v1468_v27 = vpop.f32.mrb[8].mxu0  ;;  %1519 = vmatprep.mubr.f32.mxu1 %v292_v9 }
 0x108   :  { %v247_v28 = vpop.f32.mrb[9].mxu0  ;;  %1520 = vmatmul.mubr.f32.gmra.mrb[6].mxu1 %v293_v18  ;;  %v295_v41 = vmul.f32 %v2377_v24, %v1468_v27  ;;  %v317_v18 = vld [vmem:[%s2660_s2 + $0x78] sm:$0xff] }
 0x109   :  { %v294_v36 = vmul.f32 %v2374_v17, %v247_v28  ;;  %1837 = vmatpush3.bf16.msra.mxu1 %v1834_v56  ;;  %v1850_v28 = vpack.c.bf16 %v317_v18, %v316_v16  ;;  %v990_v18 = vld [vmem:[%s2662_s5 + $0x28] sm:$0xff] }
 0x10a   :  { %1839 = vmatprep.subr.bf16.mxu1 %v1838_v19 }
 0x10b   :  { %v1471_v49 = vpop.f32.mrb[10].mxu0  ;;  %1522 = vmatprep.mubr.f32.mxu1 %v294_v36  ;;  %v2413_v36 = vpop.eup %1996 }
 0x10c   :  { %v257_v58 = vpop.f32.mrb[11].mxu0  ;;  %1523 = vmatmul.mubr.f32.gmra.mrb[8].mxu1 %v295_v41  ;;  %v297_v59 = vmul.f32 %v2389_v48, %v1471_v49  ;;  %v985_v49 = vld [vmem:[%s2662_s5] sm:$0xff] }
 0x10d   :  { %v296_v56 = vmul.f32 %v2386_v22, %v257_v58  ;;  %1841 = vmatpush3.bf16.msra.mxu1 %v1838_v19 }
 0x10e   :  { %1843 = vmatprep.subr.bf16.mxu1 %v1842_v42 }
 0x10f   :  { %v1474_v9 = vpop.f32.mrb[12].mxu0  ;;  %1525 = vmatprep.mubr.f32.mxu1 %v296_v56  ;;  %v1918_v56 = vpack.c.bf16 %v986_v54, %v985_v49 }
 0x110   :  { %v267_v27 = vpop.f32.mrb[13].mxu0  ;;  %1526 = vmatmul.mubr.f32.gmra.mrb[10].mxu1 %v297_v59  ;;  %v299_v35 = vmul.f32 %v2401_v5, %v1474_v9  ;;  %v987_v59 = vld [vmem:[%s2662_s5 + $0x10] sm:$0xff]  ;;  %v988_v9 = vld [vmem:[%s2662_s5 + $0x18] sm:$0xff] }
 0x111   :  { %v298_v19 = vmul.f32 %v2398_v63, %v267_v27  ;;  %1845 = vmatpush3.bf16.msra.mxu1 %v1842_v42  ;;  %v1922_v16 = vpack.c.bf16 %v988_v9, %v987_v59 }
 0x112   :  { %1847 = vmatprep.subr.bf16.mxu1 %v1846_v3 }
 0x113   :  { %v1477_v41 = vpop.f32.mrb[14].mxu0  ;;  %1528 = vmatprep.mubr.f32.mxu1 %v298_v19  ;;  %v992_v19 = vld [vmem:[%s2662_s5 + $0x38] sm:$0xff] }
 0x114   :  { %v277_v55 = vpop.f32.mrb[15].mxu0  ;;  %1529 = vmatmul.mubr.f32.gmra.mrb[12].mxu1 %v299_v35  ;;  %v301_v58 = vmul.f32 %v2413_v36, %v1477_v41  ;;  %v994_v35 = vld [vmem:[%s2662_s5 + $0x48] sm:$0xff] }
 0x115   :  { %v300_v42 = vmul.f32 %v2410_v33, %v277_v55  ;;  %1849 = vmatpush3.bf16.msra.mxu1 %v1846_v3  ;;  %v989_v3 = vld [vmem:[%s2662_s5 + $0x20] sm:$0xff]  ;;  %v998_v41 = vld [vmem:[%s2662_s5 + $0x68] sm:$0xff] }
 0x116   :  { %1851 = vmatprep.subr.bf16.mxu1 %v1850_v28  ;;  %v1926_v27 = vpack.c.bf16 %v990_v18, %v989_v3 }
 0x117   :  { %1531 = vmatprep.mubr.f32.mxu1 %v300_v42 }
 0x118   :  { %1532 = vmatmul.mubr.f32.gmra.mrb[14].mxu1 %v301_v58 }
 0x119   :  { %1853 = vmatpush3.bf16.msra.mxu1 %v1850_v28  ;;  %1566 = vmatprep.mubr.f32.mxu1 %v2046_v0  ;;  %v991_v0 = vld [vmem:[%s2662_s5 + $0x30] sm:$0xff]  ;;  %v996_v28 = vld [vmem:[%s2662_s5 + $0x58] sm:$0xff] }
 0x11a   :  { %1919 = vmatprep.subr.bf16.mxu1 %v1918_v56 }
 0x11c   :  { %1567 = vmatmul.mubr.f32.vlgmr.msra.gmra.mrb[0].mxu1 %v2051_v1  ;;  %v1930_v1 = vpack.c.bf16 %v992_v19, %v991_v0 }
 0x11d   :  { %1569 = vmatprep.mubr.f32.mxu1 %v2056_v2  ;;  %1921 = vmatpush3.bf16.msra.mxu1 %v1918_v56  ;;  %v993_v2 = vld [vmem:[%s2662_s5 + $0x40] sm:$0xff] }
 0x11e   :  { %1923 = vmatprep.subr.bf16.mxu1 %v1922_v16 }
 0x120   :  { %1570 = vmatmul.mubr.f32.gmra.mrb[2].mxu1 %v2063_v4  ;;  %v1934_v4 = vpack.c.bf16 %v994_v35, %v993_v2 }
 0x121   :  { %1572 = vmatprep.mubr.f32.mxu1 %v2070_v6  ;;  %1925 = vmatpush3.bf16.msra.mxu1 %v1922_v16  ;;  %v995_v6 = vld [vmem:[%s2662_s5 + $0x50] sm:$0xff] }
 0x122   :  { %1927 = vmatprep.subr.bf16.mxu1 %v1926_v27 }
 0x124   :  { %1573 = vmatmul.mubr.f32.gmra.mrb[4].mxu1 %v2075_v7  ;;  %v1938_v7 = vpack.c.bf16 %v996_v28, %v995_v6 }
 0x125   :  { %1575 = vmatprep.mubr.f32.mxu1 %v2088_v11  ;;  %1929 = vmatpush3.bf16.msra.mxu1 %v1926_v27  ;;  %v997_v11 = vld [vmem:[%s2662_s5 + $0x60] sm:$0xff] }
 0x126   :  { %1931 = vmatprep.subr.bf16.mxu1 %v1930_v1 }
 0x128   :  { %1576 = vmatmul.mubr.f32.gmra.mrb[6].mxu1 %v2093_v12  ;;  %v1942_v12 = vpack.c.bf16 %v998_v41, %v997_v11 }
 0x129   :  { %1578 = vmatprep.mubr.f32.mxu1 %v2118_v20  ;;  %1933 = vmatpush3.bf16.msra.mxu1 %v1930_v1  ;;  %v677_v20 = vld [vmem:[%s2661_s6 + $0x70] sm:$0xff] }
 0x12a   :  { %1935 = vmatprep.subr.bf16.mxu1 %v1934_v4 }
 0x12c   :  { %1579 = vmatmul.mubr.f32.gmra.mrb[8].mxu1 %v2123_v21  ;;  %v678_v21 = vld [vmem:[%s2661_s6 + $0x78] sm:$0xff] }
 0x12d   :  { %1581 = vmatprep.mubr.f32.mxu1 %v2145_v30  ;;  %1937 = vmatpush3.bf16.msra.mxu1 %v1934_v4  ;;  %v1882_v30 = vpack.c.bf16 %v678_v21, %v677_v20 }
 0x12e   :  { %1939 = vmatprep.subr.bf16.mxu1 %v1938_v7 }
 0x12f   :  { %1883 = vmatprep.subr.bf16.mxu0 %v1882_v30 }
 0x130   :  { %1582 = vmatmul.mubr.f32.gmra.mrb[10].mxu1 %v2150_v31  ;;  %v999_v31 = vld [vmem:[%s2662_s5 + $0x70] sm:$0xff]  ;;  %1885 = vmatpush3.bf16.msra.mxu0 %v1882_v30 }
 0x131   :  { %1584 = vmatprep.mubr.f32.mxu1 %v2166_v37  ;;  %1941 = vmatpush3.bf16.msra.mxu1 %v1938_v7  ;;  %v1000_v37 = vld [vmem:[%s2662_s5 + $0x78] sm:$0xff] }
 0x132   :  { %1943 = vmatprep.subr.bf16.mxu1 %v1942_v12 }
 0x134   :  { %1585 = vmatmul.mubr.f32.gmra.mrb[12].mxu1 %v2171_v38  ;;  %v1946_v38 = vpack.c.bf16 %v1000_v37, %v999_v31 }
 0x135   :  { %1587 = vmatprep.mubr.f32.mxu1 %v2187_v43  ;;  %1945 = vmatpush3.bf16.msra.mxu1 %v1942_v12  ;;  %v2490_v43 = vld [vmem:[%s2663_s4] ss:$0 sm:$0xff] }
 0x136   :  { %1947 = vmatprep.subr.bf16.mxu1 %v1946_v38 }
 0x138   :  { %1588 = vmatmul.mubr.f32.gmra.mrb[14].mxu1 %v2192_v44 }
 0x139   :  { %1949 = vmatpush3.bf16.msra.mxu1 %v1946_v38 }
 0x1ef   :  { %v1568_v44 = vpop.f32.mrb[0].mxu1 }
 0x1f0   :  { %v632_v49 = vadd.f32 %v1568_v44, %v2490_v43  ;;  %v545_v54 = vpop.f32.mrb[1].mxu1 }
 0x1f1   :  { %v631_v55 = vadd.f32 %v2490_v43, %v545_v54 }
 0x1f2   :  { %v648_v56 = vmax.f32 %v632_v49, 0.0 }
 0x1f3   :  { %v647_v42 = vmax.f32 %v631_v55, 0.0  ;;  %v1571_v58 = vpop.f32.mrb[2].mxu1 }
 0x1f4   :  { %v634_v59 = vadd.f32 %v1571_v58, %v2490_v43  ;;  %v555_v9 = vpop.f32.mrb[3].mxu1 }
 0x1f5   :  { %v633_v16 = vadd.f32 %v2490_v43, %v555_v9  ;;  %1622 = vmatprep.mubr.f32.mxu0 %v647_v42  ;;  %1734 = vmatprep.mubr.f32.mxu1 %v647_v42 }
 0x1f6   :  { %1623 = vmatmul.mubr.f32.vlgmr.msra.gmra.mrb[16].mxu0 %v648_v56  ;;  %1735 = vmatmul.mubr.f32.vlgmr.msra.gmra.mrb[16].mxu1 %v648_v56  ;;  %v650_v27 = vmax.f32 %v634_v59, 0.0 }
 0x1f7   :  { %v649_v3 = vmax.f32 %v633_v16, 0.0  ;;  %v1574_v18 = vpop.f32.mrb[4].mxu1 }
 0x1f8   :  { %v636_v0 = vadd.f32 %v1574_v18, %v2490_v43  ;;  %v565_v19 = vpop.f32.mrb[5].mxu1 }
 0x1f9   :  { %v635_v1 = vadd.f32 %v2490_v43, %v565_v19  ;;  %1625 = vmatprep.mubr.f32.mxu0 %v649_v3  ;;  %1737 = vmatprep.mubr.f32.mxu1 %v649_v3 }
 0x1fa   :  { %1626 = vmatmul.mubr.f32.gmra.mrb[18].mxu0 %v650_v27  ;;  %1738 = vmatmul.mubr.f32.gmra.mrb[18].mxu1 %v650_v27  ;;  %v652_v4 = vmax.f32 %v636_v0, 0.0 }
 0x1fb   :  { %v651_v2 = vmax.f32 %v635_v1, 0.0  ;;  %v1577_v35 = vpop.f32.mrb[6].mxu1 }
 0x1fc   :  { %v638_v6 = vadd.f32 %v1577_v35, %v2490_v43  ;;  %v575_v28 = vpop.f32.mrb[7].mxu1 }
 0x1fd   :  { %v637_v7 = vadd.f32 %v2490_v43, %v575_v28  ;;  %1628 = vmatprep.mubr.f32.mxu0 %v651_v2  ;;  %1740 = vmatprep.mubr.f32.mxu1 %v651_v2 }
 0x1fe   :  { %1629 = vmatmul.mubr.f32.gmra.mrb[20].mxu0 %v652_v4  ;;  %1741 = vmatmul.mubr.f32.gmra.mrb[20].mxu1 %v652_v4  ;;  %v654_v12 = vmax.f32 %v638_v6, 0.0 }
 0x1ff   :  { %v653_v11 = vmax.f32 %v637_v7, 0.0  ;;  %v1580_v41 = vpop.f32.mrb[8].mxu1 }
 0x200   :  { %v640_v20 = vadd.f32 %v1580_v41, %v2490_v43  ;;  %v585_v21 = vpop.f32.mrb[9].mxu1 }
 0x201   :  { %v639_v30 = vadd.f32 %v2490_v43, %v585_v21  ;;  %1631 = vmatprep.mubr.f32.mxu0 %v653_v11  ;;  %1743 = vmatprep.mubr.f32.mxu1 %v653_v11 }
 0x202   :  { %1632 = vmatmul.mubr.f32.gmra.mrb[22].mxu0 %v654_v12  ;;  %1744 = vmatmul.mubr.f32.gmra.mrb[22].mxu1 %v654_v12  ;;  %v656_v38 = vmax.f32 %v640_v20, 0.0 }
 0x203   :  { %v655_v31 = vmax.f32 %v639_v30, 0.0  ;;  %v1583_v37 = vpop.f32.mrb[10].mxu1 }
 0x204   :  { %v642_v44 = vadd.f32 %v1583_v37, %v2490_v43  ;;  %v595_v49 = vpop.f32.mrb[11].mxu1 }
 0x205   :  { %v641_v54 = vadd.f32 %v2490_v43, %v595_v49  ;;  %1634 = vmatprep.mubr.f32.mxu0 %v655_v31  ;;  %1746 = vmatprep.mubr.f32.mxu1 %v655_v31 }
 0x206   :  { %1635 = vmatmul.mubr.f32.gmra.mrb[24].mxu0 %v656_v38  ;;  %1747 = vmatmul.mubr.f32.gmra.mrb[24].mxu1 %v656_v38  ;;  %v658_v58 = vmax.f32 %v642_v44, 0.0 }
 0x207   :  { %v657_v55 = vmax.f32 %v641_v54, 0.0  ;;  %v1586_v42 = vpop.f32.mrb[12].mxu1 }
 0x208   :  { %v644_v56 = vadd.f32 %v1586_v42, %v2490_v43  ;;  %v605_v59 = vpop.f32.mrb[13].mxu1 }
 0x209   :  { %v643_v9 = vadd.f32 %v2490_v43, %v605_v59  ;;  %1637 = vmatprep.mubr.f32.mxu0 %v657_v55  ;;  %1749 = vmatprep.mubr.f32.mxu1 %v657_v55 }
 0x20a   :  { %1638 = vmatmul.mubr.f32.gmra.mrb[26].mxu0 %v658_v58  ;;  %1750 = vmatmul.mubr.f32.gmra.mrb[26].mxu1 %v658_v58  ;;  %v660_v18 = vmax.f32 %v644_v56, 0.0 }
 0x20b   :  { %v659_v16 = vmax.f32 %v643_v9, 0.0  ;;  %v1589_v3 = vpop.f32.mrb[14].mxu1 }
 0x20c   :  { %v646_v27 = vadd.f32 %v1589_v3, %v2490_v43  ;;  %v615_v0 = vpop.f32.mrb[15].mxu1 }
 0x20d   :  { %v645_v19 = vadd.f32 %v2490_v43, %v615_v0  ;;  %1640 = vmatprep.mubr.f32.mxu0 %v659_v16  ;;  %1752 = vmatprep.mubr.f32.mxu1 %v659_v16 }
 0x20e   :  { %1641 = vmatmul.mubr.f32.gmra.mrb[28].mxu0 %v660_v18  ;;  %1753 = vmatmul.mubr.f32.gmra.mrb[28].mxu1 %v660_v18  ;;  %v662_v2 = vmax.f32 %v646_v27, 0.0 }
 0x20f   :  { %v661_v1 = vmax.f32 %v645_v19, 0.0 }
 0x211   :  { %1643 = vmatprep.mubr.f32.mxu0 %v661_v1  ;;  %1755 = vmatprep.mubr.f32.mxu1 %v661_v1 }
 0x212   :  { %1644 = vmatmul.mubr.f32.gmra.mrb[30].mxu0 %v662_v2  ;;  %1756 = vmatmul.mubr.f32.gmra.mrb[30].mxu1 %v662_v2 }
 0x213   :  { %1678 = vmatprep.mubr.f32.mxu0 %v2095_v13 }
 0x2c9   :  { %v1624_v35 = vpop.f32.mrb[16].mxu0  ;;  %v2509_v4 = vpop.f32.mrb[16].mxu1 }
 0x2ca   :  { %v745_v6 = vpop.f32.mrb[17].mxu0  ;;  %v2511_v28 = vpop.f32.mrb[17].mxu1 }
 0x2cb   :  { %v1886_v7 = vpack.c.bf16 %v1624_v35, %v745_v6 }
 0x2cd   :  { %v1627_v43 = vpop.f32.mrb[18].mxu0  ;;  %1887 = vmatprep.subr.bf16.mxu0 %v1886_v7  ;;  %v2513_v11 = vpop.f32.mrb[18].mxu1 }
 0x2ce   :  { %v755_v41 = vpop.f32.mrb[19].mxu0  ;;  %1889 = vmatpush3.bf16.msra.mxu0 %v1886_v7  ;;  %v2515_v12 = vpop.f32.mrb[19].mxu1 }
 0x2cf   :  { %v1890_v20 = vpack.c.bf16 %v1627_v43, %v755_v41 }
 0x2d1   :  { %v1630_v21 = vpop.f32.mrb[20].mxu0  ;;  %1891 = vmatprep.subr.bf16.mxu0 %v1890_v20  ;;  %v2517_v30 = vpop.f32.mrb[20].mxu1 }
 0x2d2   :  { %v765_v13 = vpop.f32.mrb[21].mxu0  ;;  %1893 = vmatpush3.bf16.msra.mxu0 %v1890_v20  ;;  %v2519_v31 = vpop.f32.mrb[21].mxu1 }
 0x2d3   :  { %v1894_v37 = vpack.c.bf16 %v1630_v21, %v765_v13 }
 0x2d5   :  { %v1633_v38 = vpop.f32.mrb[22].mxu0  ;;  %1895 = vmatprep.subr.bf16.mxu0 %v1894_v37  ;;  %v2521_v44 = vpop.f32.mrb[22].mxu1 }
 0x2d6   :  { %v775_v49 = vpop.f32.mrb[23].mxu0  ;;  %1897 = vmatpush3.bf16.msra.mxu0 %v1894_v37  ;;  %v2523_v54 = vpop.f32.mrb[23].mxu1 }
 0x2d7   :  { %v1898_v55 = vpack.c.bf16 %v1633_v38, %v775_v49 }
 0x2d9   :  { %v1636_v42 = vpop.f32.mrb[24].mxu0  ;;  %1899 = vmatprep.subr.bf16.mxu0 %v1898_v55  ;;  %v2525_v58 = vpop.f32.mrb[24].mxu1 }
 0x2da   :  { %v785_v56 = vpop.f32.mrb[25].mxu0  ;;  %1901 = vmatpush3.bf16.msra.mxu0 %v1898_v55  ;;  %v2527_v59 = vpop.f32.mrb[25].mxu1 }
 0x2db   :  { %v1902_v9 = vpack.c.bf16 %v1636_v42, %v785_v56 }
 0x2dd   :  { %v1639_v16 = vpop.f32.mrb[26].mxu0  ;;  %1903 = vmatprep.subr.bf16.mxu0 %v1902_v9  ;;  %v2529_v3 = vpop.f32.mrb[26].mxu1 }
 0x2de   :  { %v795_v18 = vpop.f32.mrb[27].mxu0  ;;  %1905 = vmatpush3.bf16.msra.mxu0 %v1902_v9  ;;  %v2531_v27 = vpop.f32.mrb[27].mxu1 }
 0x2df   :  { %v1906_v0 = vpack.c.bf16 %v1639_v16, %v795_v18 }
 0x2e1   :  { %v1642_v19 = vpop.f32.mrb[28].mxu0  ;;  %1907 = vmatprep.subr.bf16.mxu0 %v1906_v0  ;;  %v2533_v1 = vpop.f32.mrb[28].mxu1 }
 0x2e2   :  { %v805_v2 = vpop.f32.mrb[29].mxu0  ;;  %1909 = vmatpush3.bf16.msra.mxu0 %v1906_v0  ;;  %v2535_v35 = vpop.f32.mrb[29].mxu1 }
 0x2e3   :  { %v1910_v6 = vpack.c.bf16 %v1642_v19, %v805_v2 }
 0x2e5   :  { %v1645_v7 = vpop.f32.mrb[30].mxu0  ;;  %1911 = vmatprep.subr.bf16.mxu0 %v1910_v6  ;;  %v2537_v43 = vpop.f32.mrb[30].mxu1 }
 0x2e6   :  { %v815_v41 = vpop.f32.mrb[31].mxu0  ;;  %1913 = vmatpush3.bf16.msra.mxu0 %v1910_v6  ;;  %v2539_v20 = vpop.f32.mrb[31].mxu1 }
 0x2e7   :  { %v1914_v21 = vpack.c.bf16 %v1645_v7, %v815_v41 }
 0x2e9   :  { %1915 = vmatprep.subr.bf16.mxu0 %v1914_v21 }
 0x2ea   :  { %1917 = vmatpush3.bf16.msra.mxu0 %v1914_v21 }
 0x2ed   :  { %1679 = vmatmul.mubr.f32.vlgmr.msra.gmra.mrb[32].mxu0 %v2126_v23 }
 0x2ee   :  { %1681 = vmatprep.mubr.f32.mxu0 %v2098_v14 }
 0x2f1   :  { %1682 = vmatmul.mubr.f32.gmra.mrb[34].mxu0 %v2128_v25 }
 0x2f2   :  { %1684 = vmatprep.mubr.f32.mxu0 %v2153_v32  ;;  %v2560_v32 = vld [vmem:[%s2664_s7] ss:$0 sm:$0xff] }
 0x2f5   :  { %1685 = vmatmul.mubr.f32.gmra.mrb[36].mxu0 %v2155_v34 }
 0x2f6   :  { %1687 = vmatprep.mubr.f32.mxu0 %v2174_v39 }
 0x2f9   :  { %1688 = vmatmul.mubr.f32.gmra.mrb[38].mxu0 %v2176_v40 }
 0x2fa   :  { %1690 = vmatprep.mubr.f32.mxu0 %v2195_v45 }
 0x2fd   :  { %1691 = vmatmul.mubr.f32.gmra.mrb[40].mxu0 %v2197_v46 }
 0x2fe   :  { %1693 = vmatprep.mubr.f32.mxu0 %v2212_v52 }
 0x301   :  { %1694 = vmatmul.mubr.f32.gmra.mrb[42].mxu0 %v2214_v53 }
 0x302   :  { %1696 = vmatprep.mubr.f32.mxu0 %v2233_v60 }
 0x305   :  { %1697 = vmatmul.mubr.f32.gmra.mrb[44].mxu0 %v2235_v62 }
 0x306   :  { %1699 = vmatprep.mubr.f32.mxu0 %v2249_v8 }
 0x309   :  { %1700 = vmatmul.mubr.f32.gmra.mrb[46].mxu0 %v2252_v10 }
 0x3c0   :  { %v1680_v14 = vpop.f32.mrb[32].mxu0 }
 0x3c1   :  { %v970_v23 = vmul.f32 %v2326_v47, %v1680_v14  ;;  %v890_v25 = vpop.f32.mrb[33].mxu0 }
 0x3c2   :  { %v969_v34 = vmul.f32 %v2334_v51, %v890_v25 }
 0x3c3   :  { %v1073_v39 = vadd.f32 %v2509_v4, %v970_v23 }
 0x3c4   :  { %v1068_v40 = vadd.f32 %v2511_v28, %v969_v34  ;;  %v1683_v45 = vpop.f32.mrb[34].mxu0 }
 0x3c5   :  { %v1154_v46 = vadd.f32 %v2560_v32, %v1073_v39  ;;  %v972_v52 = vmul.f32 %v2338_v61, %v1683_v45  ;;  %v900_v53 = vpop.f32.mrb[35].mxu0 }
 0x3c6   :  { %v1153_v60 = vadd.f32 %v2560_v32, %v1068_v40  ;;  %v971_v62 = vmul.f32 %v2346_v15, %v900_v53 }
 0x3c7   :  { %1170 = vst [vmem:[%s2665_s8 + $0x8] sm:$0xff] %v1154_v46  ;;  %v1083_v8 = vadd.f32 %v2513_v11, %v972_v52 }
 0x3c8   :  { %1169 = vst [vmem:[%s2665_s8] sm:$0xff] %v1153_v60  ;;  %v1078_v10 = vadd.f32 %v2515_v12, %v971_v62  ;;  %v1686_v47 = vpop.f32.mrb[36].mxu0 }
 0x3c9   :  { %v1156_v51 = vadd.f32 %v2560_v32, %v1083_v8  ;;  %v974_v61 = vmul.f32 %v2353_v29, %v1686_v47  ;;  %v910_v4 = vpop.f32.mrb[37].mxu0 }
 0x3ca   :  { %v1155_v15 = vadd.f32 %v2560_v32, %v1078_v10  ;;  %v973_v28 = vmul.f32 %v2350_v26, %v910_v4 }
 0x3cb   :  { %1172 = vst [vmem:[%s2665_s8 + $0x18] sm:$0xff] %v1156_v51  ;;  %v1093_v11 = vadd.f32 %v2517_v30, %v974_v61 }
 0x3cc   :  { %1171 = vst [vmem:[%s2665_s8 + $0x10] sm:$0xff] %v1155_v15  ;;  %v1088_v12 = vadd.f32 %v2519_v31, %v973_v28  ;;  %v1689_v13 = vpop.f32.mrb[38].mxu0 }
 0x3cd   :  { %v1158_v29 = vadd.f32 %v2560_v32, %v1093_v11  ;;  %v976_v37 = vmul.f32 %v2365_v57, %v1689_v13  ;;  %v920_v38 = vpop.f32.mrb[39].mxu0 }
 0x3ce   :  { %v1157_v26 = vadd.f32 %v2560_v32, %v1088_v12  ;;  %v975_v49 = vmul.f32 %v2362_v50, %v920_v38 }
 0x3cf   :  { %1174 = vst [vmem:[%s2665_s8 + $0x28] sm:$0xff] %v1158_v29  ;;  %v1103_v30 = vadd.f32 %v2521_v44, %v976_v37 }
 0x3d0   :  { %1173 = vst [vmem:[%s2665_s8 + $0x20] sm:$0xff] %v1157_v26  ;;  %v1098_v31 = vadd.f32 %v2523_v54, %v975_v49  ;;  %v1692_v55 = vpop.f32.mrb[40].mxu0 }
 0x3d1   :  { %v1160_v57 = vadd.f32 %v2560_v32, %v1103_v30  ;;  %v978_v42 = vmul.f32 %v2377_v24, %v1692_v55  ;;  %v930_v56 = vpop.f32.mrb[41].mxu0 }
 0x3d2   :  { %v1159_v50 = vadd.f32 %v2560_v32, %v1098_v31  ;;  %v977_v9 = vmul.f32 %v2374_v17, %v930_v56 }
 0x3d3   :  { %1176 = vst [vmem:[%s2665_s8 + $0x38] sm:$0xff] %v1160_v57  ;;  %v1113_v44 = vadd.f32 %v2525_v58, %v978_v42 }
 0x3d4   :  { %1175 = vst [vmem:[%s2665_s8 + $0x30] sm:$0xff] %v1159_v50  ;;  %v1108_v54 = vadd.f32 %v2527_v59, %v977_v9  ;;  %v1695_v16 = vpop.f32.mrb[42].mxu0 }
 0x3d5   :  { %v1162_v24 = vadd.f32 %v2560_v32, %v1113_v44  ;;  %v980_v18 = vmul.f32 %v2389_v48, %v1695_v16  ;;  %v940_v0 = vpop.f32.mrb[43].mxu0 }
 0x3d6   :  { %v1161_v17 = vadd.f32 %v2560_v32, %v1108_v54  ;;  %v979_v19 = vmul.f32 %v2386_v22, %v940_v0 }
 0x3d7   :  { %1178 = vst [vmem:[%s2665_s8 + $0x48] sm:$0xff] %v1162_v24  ;;  %v1123_v58 = vadd.f32 %v2529_v3, %v980_v18 }
 0x3d8   :  { %1177 = vst [vmem:[%s2665_s8 + $0x40] sm:$0xff] %v1161_v17  ;;  %v1118_v59 = vadd.f32 %v2531_v27, %v979_v19  ;;  %v1698_v2 = vpop.f32.mrb[44].mxu0 }
 0x3d9   :  { %v1164_v48 = vadd.f32 %v2560_v32, %v1123_v58  ;;  %v982_v6 = vmul.f32 %v2401_v5, %v1698_v2  ;;  %v950_v7 = vpop.f32.mrb[45].mxu0 }
 0x3da   :  { %v1163_v22 = vadd.f32 %v2560_v32, %v1118_v59  ;;  %v981_v41 = vmul.f32 %v2398_v63, %v950_v7 }
 0x3db   :  { %1180 = vst [vmem:[%s2665_s8 + $0x58] sm:$0xff] %v1164_v48  ;;  %v1133_v3 = vadd.f32 %v2533_v1, %v982_v6 }
 0x3dc   :  { %1179 = vst [vmem:[%s2665_s8 + $0x50] sm:$0xff] %v1163_v22  ;;  %v1128_v27 = vadd.f32 %v2535_v35, %v981_v41  ;;  %v1701_v21 = vpop.f32.mrb[46].mxu0 }
 0x3dd   :  { %v1166_v5 = vadd.f32 %v2560_v32, %v1133_v3  ;;  %v984_v14 = vmul.f32 %v2413_v36, %v1701_v21  ;;  %v960_v23 = vpop.f32.mrb[47].mxu0 }
 0x3de   :  { %v1165_v63 = vadd.f32 %v2560_v32, %v1128_v27  ;;  %v983_v25 = vmul.f32 %v2410_v33, %v960_v23 }
 0x3df   :  { %1182 = vst [vmem:[%s2665_s8 + $0x68] sm:$0xff] %v1166_v5  ;;  %v1143_v1 = vadd.f32 %v2537_v43, %v984_v14 }
 0x3e0   :  { %1181 = vst [vmem:[%s2665_s8 + $0x60] sm:$0xff] %v1165_v63  ;;  %v1138_v35 = vadd.f32 %v2539_v20, %v983_v25 }
 0x3e1   :  { %v1168_v34 = vadd.f32 %v2560_v32, %v1143_v1 }
 0x3e2   :  { %v1167_v36 = vadd.f32 %v2560_v32, %v1138_v35 }
 0x3e3   :  { %1184 = vst [vmem:[%s2665_s8 + $0x78] sm:$0xff] %v1168_v34 }
 0x3e4   :  { %1183 = vst [vmem:[%s2665_s8 + $0x70] sm:$0xff] %v1167_v36 }

</bundles_post_ra>
